<compile_context>
chip_gen: v6e
topology: v6e:2x2x1
jax: 0.10.0
libtpu: 0.0.40
codegen_flags: <defaults>
</compile_context>

<pallas_src>
import functools

import jax
import jax.numpy as jnp
from jax.experimental import pallas as pl
from jax.experimental.pallas import tpu as pltpu


# ----------------------------------------------------------------------------
# Pallas kernel: out = feat * weight  (weight broadcast over the batch rows)
# ----------------------------------------------------------------------------
def _bcast_mul_kernel(feat_ref, w_ref, o_ref):
    # feat_ref: (tile_b, tile_l), w_ref: (1, tile_l) -> broadcast over rows.
    o_ref[...] = feat_ref[...] * w_ref[...]


def _round_up(x, m):
    return ((x + m - 1) // m) * m


def _choose_tile(dim, max_tile):
    """Return (tile, padded_dim). `max_tile` is already aligned to the HW tiling."""
    if dim <= max_tile:
        return dim, dim                      # full-dim block, no padding needed
    return max_tile, _round_up(dim, max_tile)


def orthor_pred(feat, weight):
    """feat: (B, H, C), weight: (1, H, C)  ->  pred: (B, H, C) via Pallas."""
    B, H, C = feat.shape
    assert weight.shape == (1, H, C)
    L = H * C

    a = feat.reshape(B, L)
    w = weight.reshape(1, L).astype(feat.dtype)

    # Block sizes: sublane axis multiple of 8 (or full dim), lane axis multiple of 128
    # (or full dim).  256 x 2048 f32 = 2 MiB per block -> comfortably inside VMEM with
    # double buffering on all of v5e / v6e / v7x.
    tile_b, Bp = _choose_tile(B, 256)
    tile_l, Lp = _choose_tile(L, 2048)

    if Bp != B or Lp != L:
        a = jnp.pad(a, ((0, Bp - B), (0, Lp - L)))
    if Lp != L:
        w = jnp.pad(w, ((0, 0), (0, Lp - L)))

    grid = (Bp // tile_b, Lp // tile_l)

    out = pl.pallas_call(
        _bcast_mul_kernel,
        out_shape=jax.ShapeDtypeStruct((Bp, Lp), feat.dtype),
        grid_spec=pltpu.PrefetchScalarGridSpec(
            num_scalar_prefetch=0,
            grid=grid,
            in_specs=[
                pl.BlockSpec((tile_b, tile_l), lambda i, j: (i, j)),
                pl.BlockSpec((1, tile_l), lambda i, j: (0, j)),
            ],
            out_specs=pl.BlockSpec((tile_b, tile_l), lambda i, j: (i, j)),
        ),
        compiler_params=pltpu.CompilerParams(
            dimension_semantics=("parallel", "parallel")),
    )(a, w)

    return out[:B, :L].reshape(B, H, C)


# ----------------------------------------------------------------------------
# Full forward pass (mirrors OrthorTransform.forward)
# ----------------------------------------------------------------------------
def orthor_transform_forward(feat, weight, groups):
    pred = orthor_pred(feat, weight)
    w_view = weight.reshape(groups, -1)          # weight.view(groups, -1): pure reshape
    return pred, w_view
    # TODO(synk): self.opt_orth (Adam optimizer attached in __init__) is training-only
    # state and has no forward-pass equivalent, so it is intentionally not modeled.


if __name__ == "__main__":
    key = jax.random.PRNGKey(0)
    wkey, fkey = jax.random.split(key)

    # Small shapes consistent with the module: feat (B, feat_hw, c_dim),
    # weight (1, feat_hw, c_dim); feat_hw * c_dim must be divisible by groups.
    batch, feat_hw, c_dim, groups = 2, 16, 32, 4

    weight = jax.random.normal(wkey, (1, feat_hw, c_dim), dtype=jnp.float32)
    feat = jax.random.normal(fkey, (batch, feat_hw, c_dim), dtype=jnp.float32)

    fwd = jax.jit(functools.partial(orthor_transform_forward, groups=groups))
    pred, w_view = fwd(feat, weight)
    jax.block_until_ready((pred, w_view))

    # Correctness vs plain-JAX reference of the PyTorch forward.
    ref_pred = feat * jnp.broadcast_to(weight, feat.shape)
    ref_view = weight.reshape(groups, -1)

    assert pred.shape == (batch, feat_hw, c_dim), pred.shape
    assert w_view.shape == (groups, feat_hw * c_dim // groups), w_view.shape
    assert pred.dtype == jnp.float32
    assert bool(jnp.all(jnp.isfinite(pred)))
    assert bool(jnp.allclose(pred, ref_pred, atol=1e-6, rtol=1e-6))
    assert bool(jnp.allclose(w_view, ref_view))
    print("KERNEL_OK")
</pallas_src>

<mosaic_0001>
module attributes {stable_mosaic.version = 11 : i64} {
  func.func @_bcast_mul_kernel(%arg0: i32, %arg1: i32, %arg2: memref<2x512xf32, #tpu.memory_space<vmem>>, %arg3: memref<1x512xf32, #tpu.memory_space<vmem>>, %arg4: memref<2x512xf32, #tpu.memory_space<vmem>>) attributes {dimension_semantics = [#tpu.dimension_semantics<parallel>, #tpu.dimension_semantics<parallel>], iteration_bounds = array<i64: 1, 1>, scalar_prefetch = 0 : i64, scratch_operands = 0 : i64, tpu.core_type = #tpu.core_type<tc>, window_params = [{transform_indices = @transform_0, window_bounds = array<i64: 2, 512>}, {transform_indices = @transform_1, window_bounds = array<i64: 1, 512>}, {transform_indices = @transform_2, window_bounds = array<i64: 2, 512>}]} {
    %c0 = arith.constant 0 : index
    %c0_0 = arith.constant 0 : index
    %0 = vector.load %arg2[%c0, %c0_0] : memref<2x512xf32, #tpu.memory_space<vmem>>, vector<2x512xf32>
    %c0_1 = arith.constant 0 : index
    %c0_2 = arith.constant 0 : index
    %1 = vector.load %arg3[%c0_1, %c0_2] : memref<1x512xf32, #tpu.memory_space<vmem>>, vector<1x512xf32>
    %2 = vector.broadcast %1 : vector<1x512xf32> to vector<2x512xf32>
    %3 = arith.mulf %0, %2 : vector<2x512xf32>
    %c0_3 = arith.constant 0 : index
    %c0_4 = arith.constant 0 : index
    %4 = vector.load %arg4[%c0_3, %c0_4] : memref<2x512xf32, #tpu.memory_space<vmem>>, vector<2x512xf32>
    tpu.vector_store %arg4[%c0_3, %c0_4], %3 {strides = array<i32>} : memref<2x512xf32, #tpu.memory_space<vmem>>, vector<2x512xf32>,
    return
  }
  func.func @transform_0(%arg0: i32, %arg1: i32) -> (i32, i32) {
    %c0_i32 = arith.constant 0 : i32
    return %arg0, %arg1 : i32, i32
  }
  func.func @transform_1(%arg0: i32, %arg1: i32) -> (i32, i32) {
    %c0_i32 = arith.constant 0 : i32
    %c0_i32_0 = arith.constant 0 : i32
    return %c0_i32, %arg1 : i32, i32
  }
  func.func @transform_2(%arg0: i32, %arg1: i32) -> (i32, i32) {
    %c0_i32 = arith.constant 0 : i32
    return %arg0, %arg1 : i32, i32
  }
}

</mosaic_0001>

<bundles_post_ra>
// kernel: orthor_transform_forward.1
= control target key start
LH: loop header
LB: loop body
LE: loop exit
PB: predicated region body
PF: predicated region fallthrough
CT: control target
= control target key end

     0   :  { %v14_v0 = vlaneseq  ;;  %v55_v1 = vmov 1983009808   ;;  %s80_s1 = inlined_call_operand.vmem [shape: f32[1,512], index: 1, kind: input, shape index: {}]   ;;  %s81_s0 = inlined_call_operand.vmem [shape: f32[2,512], index: 0, kind: input, shape index: {}]   ;;  %s82_s2 = inlined_call_operand.vmem [shape: f32[2,512], index: 2, kind: output, shape index: {}]  }
   0x1   :  { %v33_v2 = vunpack.c.l.s4 %v55_v1  ;;  %v12_v4 = vld [vmem:[%s80_s1] sm:$0xf] }
   0x2   :  { %v15_v3 = vshrl.u32 %v14_v0, 7  ;;  %v11_v19 = vld [vmem:[%s81_s0] sm:$0xff] }
   0x3   :  { %v34_v5 = vunpack.c.0.s8 %v33_v2 }
   0x4   :  { %v16_v6 = vsub.s32 0, %v15_v3  ;;  %v20_v7 = vsub.s32 1, %v15_v3  ;;  %v24_v8 = vsub.s32 2, %v15_v3  ;;  %v28_v9 = vsub.s32 3, %v15_v3 }
   0x5   :  { %v37_v10 = vsub.s32 %v34_v5, %v15_v3 }
   0x6   :  { %v17_v11 = vrot.slane %v12_v4, %v16_v6  ;;  %v21_v12 = vrot.slane %v12_v4, %v20_v7  ;;  %v25_v13 = vrot.slane %v12_v4, %v24_v8  ;;  %v29_v14 = vrot.slane %v12_v4, %v28_v9 }
   0x8   :  { %v30_v15 = vcombine.low %v17_v11, %v21_v12  ;;  %v31_v16 = vcombine.low %v25_v13, %v29_v14 }
   0xa   :  { %v38_v17 = vrot.slane %v30_v15, %v37_v10  ;;  %v45_v18 = vrot.slane %v31_v16, %v37_v10 }
   0xc   :  { %v46_v20 = vcombine.low %v38_v17, %v45_v18 }
   0xe   :  { %v48_v21 = vmul.f32 %v46_v20, %v11_v19 }
  0x10   :  { %49 = vst [vmem:[%s82_s2] sm:$0xff] %v48_v21 }

</bundles_post_ra>
